<compile_context>
chip_gen: v7x
topology: tpu7x:2x2x1
jax: 0.10.0
libtpu: 0.0.40
codegen_flags: <defaults>
</compile_context>

<pallas_src>
import math

import jax
import jax.numpy as jnp
from jax.experimental import pallas as pl
from jax.experimental.pallas import tpu as pltpu

_LANES = 128
_SUBLANES = 8
_MAX_ROW_TILE = 512  # >=512 rows amortizes per-step overhead if batch grows.


def _round_up(n, m):
    return ((n + m - 1) // m) * m


def _fused_dropout_mlp_kernel(dp_ref, x_ref, u_ref, w_ref, b_ref, o_ref):
    """fc1+ReLU -> dropout -> fc2+ReLU -> fc3+ReLU -> fc4, all VMEM-resident."""
    rate = dp_ref[0]    # drop threshold (0.0 in eval mode -> keep everything)
    scale = dp_ref[1]   # 1/(1-p) inverted-dropout scale (1.0 in eval mode)

    # fc1 + ReLU
    h = jnp.dot(x_ref[...], w_ref[0], preferred_element_type=jnp.float32) + b_ref[0]
    h = jnp.maximum(h, 0.0)

    # Inverted dropout: keep where u >= rate, scale survivors by 1/(1-p).
    h = jnp.where(u_ref[...] >= rate, h * scale, 0.0)

    # fc2 + ReLU
    h = jnp.dot(h, w_ref[1], preferred_element_type=jnp.float32) + b_ref[1]
    h = jnp.maximum(h, 0.0)

    # fc3 + ReLU
    h = jnp.dot(h, w_ref[2], preferred_element_type=jnp.float32) + b_ref[2]
    h = jnp.maximum(h, 0.0)

    # fc4 (out_features padded to 128 lanes; wrapper slices column 0).
    y = jnp.dot(h, w_ref[3], preferred_element_type=jnp.float32) + b_ref[3]
    o_ref[...] = y.astype(o_ref.dtype)


def prepare_params(params):
    """One-time pad/transpose/stack of the four Linear layers.

    PyTorch (out,in) weights -> zero-padded (p,p) in (in,out) orientation,
    stacked to (4,p,p); biases -> (4,1,p).  Reuse the result across calls.
    """
    (w1, b1), (w2, b2), (w3, b3), (w4, b4) = params
    dims = [w1.shape[1], w1.shape[0], w2.shape[0], w3.shape[0], w4.shape[0]]
    p = max(_round_up(d, _LANES) for d in dims)
    ws, bs = [], []
    for w, b in ((w1, b1), (w2, b2), (w3, b3), (w4, b4)):
        out_f, in_f = w.shape
        wp = jnp.zeros((p, p), jnp.float32).at[:in_f, :out_f].set(
            jnp.asarray(w, jnp.float32).T)
        bp = jnp.zeros((1, p), jnp.float32).at[0, :out_f].set(
            jnp.asarray(b, jnp.float32))
        ws.append(wp)
        bs.append(bp)
    return jnp.stack(ws), jnp.stack(bs)  # (4,p,p), (4,1,p)


@jax.jit
def _forward_padded(w_stack, b_stack, x, dp, key):
    batch, n_in = x.shape
    p = w_stack.shape[-1]

    p_batch = _round_up(batch, _SUBLANES)
    tile_rows = min(_MAX_ROW_TILE, p_batch)
    p_batch = _round_up(p_batch, tile_rows)
    grid = (p_batch // tile_rows,)

    xp = jnp.zeros((p_batch, p), jnp.float32).at[:batch, :n_in].set(
        x.astype(jnp.float32))
    u = jax.random.uniform(key, (p_batch, p), jnp.float32)

    compiler_params = None
    if jax.default_backend() == "tpu":
        compiler_params = pltpu.CompilerParams(dimension_semantics=("parallel",))

    out = pl.pallas_call(
        _fused_dropout_mlp_kernel,
        out_shape=jax.ShapeDtypeStruct((p_batch, p), jnp.float32),
        grid=grid,
        in_specs=[
            pl.BlockSpec(memory_space=pltpu.MemorySpace.SMEM),   # dp = [rate, scale]
            pl.BlockSpec((tile_rows, p), lambda i: (i, 0)),      # x tile
            pl.BlockSpec((tile_rows, p), lambda i: (i, 0)),      # dropout uniforms
            pl.BlockSpec((4, p, p), lambda i: (0, 0, 0)),        # weight slab (resident)
            pl.BlockSpec((4, 1, p), lambda i: (0, 0, 0)),        # bias slab (resident)
        ],
        out_specs=pl.BlockSpec((tile_rows, p), lambda i: (i, 0)),
        compiler_params=compiler_params,
    )(dp, xp, u, w_stack, b_stack)

    # fc4 has out_features=1: keep only the real column / rows (fused under jit).
    return out[:batch, :1]


def dropout_model_forward(prepared, x, *, dropout_rate, apply_dropout=True, key=None):
    """Matches DropoutModel.forward(x, apply_dropout); returns (batch, 1)."""
    w_stack, b_stack = prepared
    if apply_dropout and dropout_rate > 0.0:
        rate = float(dropout_rate)
        scale = 1.0 / (1.0 - rate)
        if key is None:
            key = jax.random.PRNGKey(0)
    else:
        rate, scale = 0.0, 1.0   # u >= 0 always keeps, scale 1 -> identity path
        key = jax.random.PRNGKey(0)
    dp = jnp.asarray([rate, scale], jnp.float32)
    return _forward_padded(w_stack, b_stack, x, dp, key)


def init_dropout_model_params(key, n_bits, n_1, n_2, n_3):
    """Deterministic init matching nn.Linear's default uniform(-1/sqrt(in), 1/sqrt(in))."""
    sizes = [(n_bits, n_1), (n_1, n_2), (n_2, n_3), (n_3, 1)]
    params = []
    for in_f, out_f in sizes:
        key, kw, kb = jax.random.split(key, 3)
        bound = 1.0 / math.sqrt(in_f)
        w = jax.random.uniform(kw, (out_f, in_f), jnp.float32, -bound, bound)
        b = jax.random.uniform(kb, (out_f,), jnp.float32, -bound, bound)
        params.append((w, b))
    return params


if __name__ == "__main__":
    # Small, forward-implied shapes.
    batch = 8
    n_bits = 16
    n_1, n_2, n_3 = 32, 32, 32
    dropout_rate = 0.2

    key = jax.random.PRNGKey(0)
    k_params, k_x, k_drop = jax.random.split(key, 3)
    params = init_dropout_model_params(k_params, n_bits, n_1, n_2, n_3)
    x = jax.random.normal(k_x, (batch, n_bits), jnp.float32)

    prepared = prepare_params(params)   # pad/transpose/stack ONCE, reuse per call

    y_drop = dropout_model_forward(prepared, x, dropout_rate=dropout_rate,
                                   apply_dropout=True, key=k_drop)
    y_nodrop = dropout_model_forward(prepared, x, dropout_rate=dropout_rate,
                                     apply_dropout=False)
    jax.block_until_ready((y_drop, y_nodrop))

    assert y_drop.shape == (batch, 1) and y_nodrop.shape == (batch, 1)
    assert bool(jnp.all(jnp.isfinite(y_drop)))
    assert bool(jnp.all(jnp.isfinite(y_nodrop)))

    # Cross-check the deterministic (no-dropout) path against pure JAX.
    def _ref(params, x):
        (w1, b1), (w2, b2), (w3, b3), (w4, b4) = params
        h = jnp.maximum(x @ w1.T + b1, 0.0)
        h = jnp.maximum(h @ w2.T + b2, 0.0)
        h = jnp.maximum(h @ w3.T + b3, 0.0)
        return h @ w4.T + b4

    ref = _ref(params, x)
    assert bool(jnp.allclose(y_nodrop, ref, atol=1e-5, rtol=1e-5))

    # apply_dropout=True with rate=0 must also reproduce the reference exactly.
    y_p0 = dropout_model_forward(prepared, x, dropout_rate=0.0,
                                 apply_dropout=True, key=k_drop)
    assert bool(jnp.allclose(y_p0, ref, atol=1e-5, rtol=1e-5))

    print("KERNEL_OK")
</pallas_src>

<mosaic_0001>
module attributes {stable_mosaic.version = 11 : i64} {
  func.func @_fused_dropout_mlp_kernel(%arg0: i32, %arg1: memref<2xf32, #tpu.memory_space<smem>>, %arg2: memref<8x128xf32, #tpu.memory_space<vmem>>, %arg3: memref<8x128xf32, #tpu.memory_space<vmem>>, %arg4: memref<4x128x128xf32, #tpu.memory_space<vmem>>, %arg5: memref<4x1x128xf32, #tpu.memory_space<vmem>>, %arg6: memref<8x128xf32, #tpu.memory_space<vmem>>) attributes {dimension_semantics = [#tpu.dimension_semantics<arbitrary>], iteration_bounds = array<i64: 1>, scalar_prefetch = 0 : i64, scratch_operands = 0 : i64, tpu.core_type = #tpu.core_type<tc>, window_params = [{transform_indices = @transform_0, window_bounds = array<i64: 2>}, {transform_indices = @transform_1, window_bounds = array<i64: 8, 128>}, {transform_indices = @transform_2, window_bounds = array<i64: 8, 128>}, {pipeline_mode = #tpu.pipeline_mode<synchronous>, transform_indices = @transform_3, window_bounds = array<i64: 4, 128, 128>}, {pipeline_mode = #tpu.pipeline_mode<synchronous>, transform_indices = @transform_4, window_bounds = array<i64: 4, 1, 128>}, {transform_indices = @transform_5, window_bounds = array<i64: 8, 128>}]} {
    %c0 = arith.constant 0 : index
    %0 = memref.load %arg1[%c0] : memref<2xf32, #tpu.memory_space<smem>>
    %c1 = arith.constant 1 : index
    %1 = memref.load %arg1[%c1] : memref<2xf32, #tpu.memory_space<smem>>
    %c0_0 = arith.constant 0 : index
    %c0_1 = arith.constant 0 : index
    %2 = vector.load %arg2[%c0_0, %c0_1] : memref<8x128xf32, #tpu.memory_space<vmem>>, vector<8x128xf32>
    %c0_2 = arith.constant 0 : index
    %c0_3 = arith.constant 0 : index
    %c0_4 = arith.constant 0 : index
    %3 = vector.load %arg4[%c0_2, %c0_3, %c0_4] : memref<4x128x128xf32, #tpu.memory_space<vmem>>, vector<1x128x128xf32>
    %4 = vector.shape_cast %3 : vector<1x128x128xf32> to vector<128x128xf32>
    %cst = arith.constant dense<0.000000e+00> : vector<8x128xf32>
    %5 = tpu.matmul %2, %4, %cst {dimension_numbers = #tpu.dot_dimension_numbers<[1], [0], [0], [1], [0, 0, 1, 1], [], []>} : vector<8x128xf32>, vector<128x128xf32>, vector<8x128xf32> -> vector<8x128xf32>
    %c0_5 = arith.constant 0 : index
    %c0_6 = arith.constant 0 : index
    %c0_7 = arith.constant 0 : index
    %6 = vector.load %arg5[%c0_5, %c0_6, %c0_7] : memref<4x1x128xf32, #tpu.memory_space<vmem>>, vector<1x1x128xf32>
    %7 = vector.shape_cast %6 : vector<1x1x128xf32> to vector<1x128xf32>
    %8 = vector.broadcast %7 : vector<1x128xf32> to vector<8x128xf32>
    %9 = arith.addf %5, %8 : vector<8x128xf32>
    %cst_8 = arith.constant 0.000000e+00 : f32
    %10 = vector.broadcast %cst_8 : f32 to vector<8x128xf32>
    %11 = arith.maximumf %9, %10 : vector<8x128xf32>
    %c0_9 = arith.constant 0 : index
    %c0_10 = arith.constant 0 : index
    %12 = vector.load %arg3[%c0_9, %c0_10] : memref<8x128xf32, #tpu.memory_space<vmem>>, vector<8x128xf32>
    %13 = vector.broadcast %0 : f32 to vector<8x128xf32>
    %14 = arith.cmpf oge, %12, %13 : vector<8x128xf32>
    %15 = vector.broadcast %1 : f32 to vector<8x128xf32>
    %16 = arith.mulf %11, %15 : vector<8x128xf32>
    %cst_11 = arith.constant 0.000000e+00 : f32
    %17 = vector.broadcast %cst_11 : f32 to vector<8x128xf32>
    %18 = arith.select %14, %16, %17 : vector<8x128xi1>, vector<8x128xf32>
    %c1_12 = arith.constant 1 : index
    %c0_13 = arith.constant 0 : index
    %c0_14 = arith.constant 0 : index
    %19 = vector.load %arg4[%c1_12, %c0_13, %c0_14] : memref<4x128x128xf32, #tpu.memory_space<vmem>>, vector<1x128x128xf32>
    %20 = vector.shape_cast %19 : vector<1x128x128xf32> to vector<128x128xf32>
    %cst_15 = arith.constant dense<0.000000e+00> : vector<8x128xf32>
    %21 = tpu.matmul %18, %20, %cst_15 {dimension_numbers = #tpu.dot_dimension_numbers<[1], [0], [0], [1], [0, 0, 1, 1], [], []>} : vector<8x128xf32>, vector<128x128xf32>, vector<8x128xf32> -> vector<8x128xf32>
    %c1_16 = arith.constant 1 : index
    %c0_17 = arith.constant 0 : index
    %c0_18 = arith.constant 0 : index
    %22 = vector.load %arg5[%c1_16, %c0_17, %c0_18] : memref<4x1x128xf32, #tpu.memory_space<vmem>>, vector<1x1x128xf32>
    %23 = vector.shape_cast %22 : vector<1x1x128xf32> to vector<1x128xf32>
    %24 = vector.broadcast %23 : vector<1x128xf32> to vector<8x128xf32>
    %25 = arith.addf %21, %24 : vector<8x128xf32>
    %cst_19 = arith.constant 0.000000e+00 : f32
    %26 = vector.broadcast %cst_19 : f32 to vector<8x128xf32>
    %27 = arith.maximumf %25, %26 : vector<8x128xf32>
    %c2 = arith.constant 2 : index
    %c0_20 = arith.constant 0 : index
    %c0_21 = arith.constant 0 : index
    %28 = vector.load %arg4[%c2, %c0_20, %c0_21] : memref<4x128x128xf32, #tpu.memory_space<vmem>>, vector<1x128x128xf32>
    %29 = vector.shape_cast %28 : vector<1x128x128xf32> to vector<128x128xf32>
    %cst_22 = arith.constant dense<0.000000e+00> : vector<8x128xf32>
    %30 = tpu.matmul %27, %29, %cst_22 {dimension_numbers = #tpu.dot_dimension_numbers<[1], [0], [0], [1], [0, 0, 1, 1], [], []>} : vector<8x128xf32>, vector<128x128xf32>, vector<8x128xf32> -> vector<8x128xf32>
    %c2_23 = arith.constant 2 : index
    %c0_24 = arith.constant 0 : index
    %c0_25 = arith.constant 0 : index
    %31 = vector.load %arg5[%c2_23, %c0_24, %c0_25] : memref<4x1x128xf32, #tpu.memory_space<vmem>>, vector<1x1x128xf32>
    %32 = vector.shape_cast %31 : vector<1x1x128xf32> to vector<1x128xf32>
    %33 = vector.broadcast %32 : vector<1x128xf32> to vector<8x128xf32>
    %34 = arith.addf %30, %33 : vector<8x128xf32>
    %cst_26 = arith.constant 0.000000e+00 : f32
    %35 = vector.broadcast %cst_26 : f32 to vector<8x128xf32>
    %36 = arith.maximumf %34, %35 : vector<8x128xf32>
    %c3 = arith.constant 3 : index
    %c0_27 = arith.constant 0 : index
    %c0_28 = arith.constant 0 : index
    %37 = vector.load %arg4[%c3, %c0_27, %c0_28] : memref<4x128x128xf32, #tpu.memory_space<vmem>>, vector<1x128x128xf32>
    %38 = vector.shape_cast %37 : vector<1x128x128xf32> to vector<128x128xf32>
    %cst_29 = arith.constant dense<0.000000e+00> : vector<8x128xf32>
    %39 = tpu.matmul %36, %38, %cst_29 {dimension_numbers = #tpu.dot_dimension_numbers<[1], [0], [0], [1], [0, 0, 1, 1], [], []>} : vector<8x128xf32>, vector<128x128xf32>, vector<8x128xf32> -> vector<8x128xf32>
    %c3_30 = arith.constant 3 : index
    %c0_31 = arith.constant 0 : index
    %c0_32 = arith.constant 0 : index
    %40 = vector.load %arg5[%c3_30, %c0_31, %c0_32] : memref<4x1x128xf32, #tpu.memory_space<vmem>>, vector<1x1x128xf32>
    %41 = vector.shape_cast %40 : vector<1x1x128xf32> to vector<1x128xf32>
    %42 = vector.broadcast %41 : vector<1x128xf32> to vector<8x128xf32>
    %43 = arith.addf %39, %42 : vector<8x128xf32>
    %c0_33 = arith.constant 0 : index
    %c0_34 = arith.constant 0 : index
    %44 = vector.load %arg6[%c0_33, %c0_34] : memref<8x128xf32, #tpu.memory_space<vmem>>, vector<8x128xf32>
    tpu.vector_store %arg6[%c0_33, %c0_34], %43 {strides = array<i32>} : memref<8x128xf32, #tpu.memory_space<vmem>>, vector<8x128xf32>,
    return
  }
  func.func @transform_0(%arg0: i32) -> i32 {
    %c0_i32 = arith.constant 0 : i32
    %c0_i32_0 = arith.constant 0 : i32
    return %c0_i32 : i32
  }
  func.func @transform_1(%arg0: i32) -> (i32, i32) {
    %c0_i32 = arith.constant 0 : i32
    %c0_i32_0 = arith.constant 0 : i32
    return %arg0, %c0_i32 : i32, i32
  }
  func.func @transform_2(%arg0: i32) -> (i32, i32) {
    %c0_i32 = arith.constant 0 : i32
    %c0_i32_0 = arith.constant 0 : i32
    return %arg0, %c0_i32 : i32, i32
  }
  func.func @transform_3(%arg0: i32) -> (i32, i32, i32) {
    %c0_i32 = arith.constant 0 : i32
    %c0_i32_0 = arith.constant 0 : i32
    %c0_i32_1 = arith.constant 0 : i32
    %c0_i32_2 = arith.constant 0 : i32
    return %c0_i32, %c0_i32_0, %c0_i32_1 : i32, i32, i32
  }
  func.func @transform_4(%arg0: i32) -> (i32, i32, i32) {
    %c0_i32 = arith.constant 0 : i32
    %c0_i32_0 = arith.constant 0 : i32
    %c0_i32_1 = arith.constant 0 : i32
    %c0_i32_2 = arith.constant 0 : i32
    return %c0_i32, %c0_i32_0, %c0_i32_1 : i32, i32, i32
  }
  func.func @transform_5(%arg0: i32) -> (i32, i32) {
    %c0_i32 = arith.constant 0 : i32
    %c0_i32_0 = arith.constant 0 : i32
    return %arg0, %c0_i32 : i32, i32
  }
}

</mosaic_0001>

<bundles_post_ra>
// kernel: _forward_padded.1
= control target key start
LH: loop header
LB: loop body
LE: loop exit
PB: predicated region body
PF: predicated region fallthrough
CT: control target
= control target key end

     0   :  { %10 = vsyncpa [#allocation4], 0  ;;  %s915_s0 = inlined_call_operand.vmem [shape: f32[2], index: 0, kind: input, shape index: {}]   ;;  %s916_s1 = inlined_call_operand.vmem [shape: f32[8,128], index: 1, kind: input, shape index: {}]   ;;  %s917_s2 = inlined_call_operand.vmem [shape: f32[8,128], index: 2, kind: input, shape index: {}]   ;;  %s918_s3 = inlined_call_operand.hbm [shape: f32[4,128,128], index: 3, kind: input, shape index: {}]   ;;  %s919_s4 = inlined_call_operand.vmem [shape: f32[4,1,128], index: 4, kind: input, shape index: {}]   ;;  %s920_s5 = inlined_call_operand.vmem [shape: f32[8,128], index: 5, kind: output, shape index: {}]  }
   0x1   :  { %s18_s20 = sshll.u32 %s915_s0, 4  ;;  %s19_s20 = int_to_ptr.vmem [resolvable:$true] %s18_s20 }
   0x2   :  { %11 = vsyncpa [#allocation3], 0  ;;  %s764_s21 = scalar_lea.vmem %s19_s20, 16  ;;  %p769_p1 = scmp.lt.s32.totalorder %s19_s20, %s19_s20 }
   0x3   :  { %p765_p0 = scmp.ne.s32.totalorder %s19_s20, %s764_s21  ;;  %p770_p2 = scmp.lt.s32.totalorder %s764_s21, %s764_s21 }
   0x5   :  { %p771_p3 = por %p770_p2, %p769_p1 }
   0x7   :  { %p772_p4 = pnand %p771_p3, %p765_p0 }
   0x9   :  { %775 = shalt.err (!%p772_p4)
}
   0xa   :  { %s802_s22 = smov [#allocation2]   ;;  %s803_s23 = smov [#allocation5]  }
   0xb   :  { %21 = dma.vmem_to_smem %s19_s20, 16, %s802_s22, [#allocation4]  }
   0xc   :  { %s31_s24 = sshll.u32 %s803_s23, 4  ;;  %s776_s27 = scalar_lea.hbm %s918_s3, 8192  ;;  %s32_s24 = int_to_ptr.vmem [resolvable:$true] %s31_s24 }
   0xd   :  { %p777_p5 = scmp.ne.s32.totalorder %s918_s3, %s776_s27  ;;  %p780_p6 = scmp.lt.u32.totalorder %s776_s27, %s918_s3 }
   0xf   :  { %p782_p7 = pnand %p780_p6, %p777_p5 }
  0x11   :  { %785 = shalt.err (!%p782_p7)
}
  0x12   :  { %s786_s6 = scalar_lea.vmem %s32_s24, 8192  ;;  %p791_p9 = scmp.lt.s32.totalorder %s32_s24, %s32_s24 }
  0x13   :  { %p787_p8 = scmp.ne.s32.totalorder %s32_s24, %s786_s6  ;;  %p792_p10 = scmp.lt.s32.totalorder %s786_s6, %s786_s6 }
  0x15   :  { %p793_p11 = por %p792_p10, %p791_p9 }
  0x17   :  { %p794_p12 = pnand %p793_p11, %p787_p8 }
  0x19   :  { %797 = shalt.err (!%p794_p12)
}
  0x1a   :  { %s804_s7 = smov 128   ;;  %s805_s8 = smov 8  }
  0x1b   :  { %37 = dma.hbm_to_vmem [thread:$0]  %s918_s3, 8192, %s32_s24, [#allocation3], %s804_s7, %s804_s7, %s805_s8  }
  0x1c   :  { %798 = dma.done.wait [#allocation4], 16  }
  0x1d   :  { %799 = vsyncadd [#allocation4], 4294967280 }
  0x1e   :  { %800 = dma.done.wait [#allocation3], 8192  }
  0x1f   :  { %801 = vsyncadd [#allocation3], 4294959104 }
  0x20   :  { %46 = sfence }
  0x21   :  { %v50_v0 = vld [vmem:[#allocation5] sm:$0xff]  ;;  %v51_v1 = vld [vmem:[#allocation5 + $0x8] sm:$0xff]  ;;  %v52_v2 = vld [vmem:[#allocation5 + $0x10] sm:$0xff]  ;;  %v806_v3 = vmov 0.0|0.0   ;;  %vm807_vm0 = vmmov 0   ;;  %v808_v6 = vmov 0.0  }
  0x22   :  { %661 = vmatprep.subr.bf16.mxu0 %v806_v3  ;;  %v662_v4 = vpack.c.bf16 %v51_v1, %v50_v0  ;;  %v53_v5 = vld [vmem:[#allocation5 + $0x18] sm:$0xff]  ;;  %553 = vmatprep.mubr.msk.f32.mxu0 %vm807_vm0, %v808_v6  ;;  %v54_v8 = vld [vmem:[#allocation5 + $0x20] sm:$0xff]  ;;  %v55_v9 = vld [vmem:[#allocation5 + $0x28] sm:$0xff]  ;;  %s444_s12 = sld [smem:[#allocation2 + $0x1]] }
  0x23   :  { %685 = vmatprep.subr.bf16.mxu1 %v806_v3  ;;  %588 = vmatprep.mubr.msk.f32.mxu1 %vm807_vm0, %v808_v6  ;;  %v665_v7 = vpack.c.bf16 %v53_v5, %v52_v2  ;;  %v151_v10 = vld [vmem:[#allocation5 + $0x80] sm:$0xff]  ;;  %v152_v11 = vld [vmem:[#allocation5 + $0x88] sm:$0xff]  ;;  %v153_v12 = vld [vmem:[#allocation5 + $0x90] sm:$0xff]  ;;  %v668_v14 = vpack.c.bf16 %v55_v9, %v54_v8 }
  0x24   :  { %663 = vmatpush3.bf16.msra.mxu0 %v662_v4  ;;  %v154_v13 = vld [vmem:[#allocation5 + $0x98] sm:$0xff]  ;;  %v686_v15 = vpack.c.bf16 %v152_v11, %v151_v10  ;;  %v56_v16 = vld [vmem:[#allocation5 + $0x30] sm:$0xff]  ;;  %v155_v19 = vld [vmem:[#allocation5 + $0xa0] sm:$0xff] }
  0x25   :  { %664 = vmatprep.subr.bf16.mxu0 %v806_v3  ;;  %v57_v17 = vld [vmem:[#allocation5 + $0x38] sm:$0xff]  ;;  %v689_v18 = vpack.c.bf16 %v154_v13, %v153_v12  ;;  %v156_v20 = vld [vmem:[#allocation5 + $0xa8] sm:$0xff]  ;;  %v58_v22 = vld [vmem:[#allocation5 + $0x40] sm:$0xff] }
  0x26   :  { %687 = vmatpush3.bf16.msra.mxu1 %v686_v15  ;;  %v671_v21 = vpack.c.bf16 %v57_v17, %v56_v16  ;;  %v59_v23 = vld [vmem:[#allocation5 + $0x48] sm:$0xff]  ;;  %v692_v24 = vpack.c.bf16 %v156_v20, %v155_v19  ;;  %v157_v25 = vld [vmem:[#allocation5 + $0xb0] sm:$0xff]  ;;  %v158_v26 = vld [vmem:[#allocation5 + $0xb8] sm:$0xff] }
  0x27   :  { %688 = vmatprep.subr.bf16.mxu1 %v806_v3  ;;  %v674_v27 = vpack.c.bf16 %v59_v23, %v58_v22  ;;  %v60_v28 = vld [vmem:[#allocation5 + $0x50] sm:$0xff]  ;;  %v61_v29 = vld [vmem:[#allocation5 + $0x58] sm:$0xff]  ;;  %v695_v30 = vpack.c.bf16 %v158_v26, %v157_v25  ;;  %v159_v31 = vld [vmem:[#allocation5 + $0xc0] sm:$0xff] }
  0x28   :  { %666 = vmatpush3.bf16.msra.mxu0 %v665_v7  ;;  %v160_v32 = vld [vmem:[#allocation5 + $0xc8] sm:$0xff]  ;;  %v677_v33 = vpack.c.bf16 %v61_v29, %v60_v28  ;;  %v62_v34 = vld [vmem:[#allocation5 + $0x60] sm:$0xff]  ;;  %v161_v37 = vld [vmem:[#allocation5 + $0xd0] sm:$0xff]  ;;  %v147_v16 = vstv %s444_s12 }
  0x29   :  { %667 = vmatprep.subr.bf16.mxu0 %v806_v3  ;;  %v63_v35 = vld [vmem:[#allocation5 + $0x68] sm:$0xff]  ;;  %v698_v36 = vpack.c.bf16 %v160_v32, %v159_v31  ;;  %v162_v38 = vld [vmem:[#allocation5 + $0xd8] sm:$0xff]  ;;  %v64_v40 = vld [vmem:[#allocation5 + $0x70] sm:$0xff] }
  0x2a   :  { %690 = vmatpush3.bf16.msra.mxu1 %v689_v18  ;;  %v680_v39 = vpack.c.bf16 %v63_v35, %v62_v34  ;;  %v65_v41 = vld [vmem:[#allocation5 + $0x78] sm:$0xff]  ;;  %v701_v42 = vpack.c.bf16 %v162_v38, %v161_v37  ;;  %v49_v44 = vld [vmem:[%s916_s1] sm:$0xff]  ;;  %v164_v46 = vld [vmem:[#allocation5 + $0xe8] sm:$0xff]  ;;  %s47_s1 = sld [smem:[#allocation2]] }
  0x2b   :  { %691 = vmatprep.subr.bf16.mxu1 %v806_v3  ;;  %v683_v43 = vpack.c.bf16 %v65_v41, %v64_v40  ;;  %v163_v45 = vld [vmem:[#allocation5 + $0xe0] sm:$0xff]  ;;  %v165_v48 = vld [vmem:[#allocation5 + $0xf0] sm:$0xff]  ;;  %v166_v49 = vld [vmem:[#allocation5 + $0xf8] sm:$0xff] }
  0x2c   :  { %669 = vmatpush3.bf16.msra.mxu0 %v668_v14  ;;  %v704_v47 = vpack.c.bf16 %v164_v46, %v163_v45  ;;  %v707_v50 = vpack.c.bf16 %v166_v49, %v165_v48  ;;  %v247_v51 = vld [vmem:[#allocation5 + $0x100] sm:$0xff]  ;;  %v248_v52 = vld [vmem:[#allocation5 + $0x108] sm:$0xff]  ;;  %v249_v53 = vld [vmem:[#allocation5 + $0x110] sm:$0xff] }
  0x2d   :  { %670 = vmatprep.subr.bf16.mxu0 %v806_v3  ;;  %v710_v54 = vpack.c.bf16 %v248_v52, %v247_v51  ;;  %v250_v55 = vld [vmem:[#allocation5 + $0x118] sm:$0xff]  ;;  %v251_v57 = vld [vmem:[#allocation5 + $0x120] sm:$0xff]  ;;  %v252_v58 = vld [vmem:[#allocation5 + $0x128] sm:$0xff] }
  0x2e   :  { %693 = vmatpush3.bf16.msra.mxu1 %v692_v24  ;;  %v713_v56 = vpack.c.bf16 %v250_v55, %v249_v53  ;;  %v716_v59 = vpack.c.bf16 %v252_v58, %v251_v57  ;;  %v253_v60 = vld [vmem:[#allocation5 + $0x130] sm:$0xff]  ;;  %v254_v61 = vld [vmem:[#allocation5 + $0x138] sm:$0xff]  ;;  %v255_v63 = vld [vmem:[#allocation5 + $0x140] sm:$0xff] }
  0x2f   :  { %694 = vmatprep.subr.bf16.mxu1 %v806_v3  ;;  %v719_v62 = vpack.c.bf16 %v254_v61, %v253_v60  ;;  %v256_v0 = vld [vmem:[#allocation5 + $0x148] sm:$0xff]  ;;  %v257_v2 = vld [vmem:[#allocation5 + $0x150] sm:$0xff]  ;;  %v258_v4 = vld [vmem:[#allocation5 + $0x158] sm:$0xff] }
  0x30   :  { %672 = vmatpush3.bf16.msra.mxu0 %v671_v21  ;;  %v722_v1 = vpack.c.bf16 %v256_v0, %v255_v63  ;;  %v725_v5 = vpack.c.bf16 %v258_v4, %v257_v2  ;;  %v259_v7 = vld [vmem:[#allocation5 + $0x160] sm:$0xff]  ;;  %v260_v8 = vld [vmem:[#allocation5 + $0x168] sm:$0xff]  ;;  %v145_v15 = vstv %s47_s1  ;;  %v261_v19 = vld [vmem:[#allocation5 + $0x170] sm:$0xff] }
  0x31   :  { %673 = vmatprep.subr.bf16.mxu0 %v806_v3  ;;  %v728_v9 = vpack.c.bf16 %v260_v8, %v259_v7  ;;  %v445_v10 = vld [vmem:[%s919_s4] ss:$0 sm:$0xff]  ;;  %v262_v20 = vld [vmem:[#allocation5 + $0x178] sm:$0xff]  ;;  %v344_v23 = vld [vmem:[#allocation5 + $0x188] sm:$0xff] }
  0x32   :  { %696 = vmatpush3.bf16.msra.mxu1 %v695_v30  ;;  %v144_v14 = vld [vmem:[%s917_s2] sm:$0xff]  ;;  %v731_v21 = vpack.c.bf16 %v262_v20, %v261_v19  ;;  %v345_v24 = vld [vmem:[#allocation5 + $0x190] sm:$0xff]  ;;  %v346_v26 = vld [vmem:[#allocation5 + $0x198] sm:$0xff] }
  0x33   :  { %697 = vmatprep.subr.bf16.mxu1 %v806_v3  ;;  %vm146_vm1 = vcmp.ge.f32.partialorder %v144_v14, %v145_v15  ;;  %v343_v22 = vld [vmem:[#allocation5 + $0x180] sm:$0xff]  ;;  %v348_v29 = vld [vmem:[#allocation5 + $0x1a8] sm:$0xff]  ;;  %v350_v31 = vld [vmem:[#allocation5 + $0x1b8] sm:$0xff] }
  0x34   :  { %675 = vmatpush3.bf16.msra.mxu0 %v674_v27  ;;  %v734_v25 = vpack.c.bf16 %v344_v23, %v343_v22  ;;  %v737_v27 = vpack.c.bf16 %v346_v26, %v345_v24  ;;  %v347_v28 = vld [vmem:[#allocation5 + $0x1a0] sm:$0xff]  ;;  %v352_v34 = vld [vmem:[#allocation5 + $0x1c8] sm:$0xff]  ;;  %v354_v37 = vld [vmem:[#allocation5 + $0x1d8] sm:$0xff] }
  0x35   :  { %676 = vmatprep.subr.bf16.mxu0 %v806_v3  ;;  %v740_v30 = vpack.c.bf16 %v348_v29, %v347_v28  ;;  %v356_v40 = vld [vmem:[#allocation5 + $0x1e8] sm:$0xff]  ;;  %v358_v48 = vld [vmem:[#allocation5 + $0x1f8] sm:$0xff] }
  0x36   :  { %699 = vmatpush3.bf16.msra.mxu1 %v698_v36  ;;  %v353_v36 = vld [vmem:[#allocation5 + $0x1d0] sm:$0xff] }
  0x37   :  { %700 = vmatprep.subr.bf16.mxu1 %v806_v3  ;;  %v749_v38 = vpack.c.bf16 %v354_v37, %v353_v36 }
  0x38   :  { %678 = vmatpush3.bf16.msra.mxu0 %v677_v33  ;;  %v351_v33 = vld [vmem:[#allocation5 + $0x1c0] sm:$0xff] }
  0x39   :  { %679 = vmatprep.subr.bf16.mxu0 %v806_v3  ;;  %v746_v35 = vpack.c.bf16 %v352_v34, %v351_v33 }
  0x3a   :  { %702 = vmatpush3.bf16.msra.mxu1 %v701_v42  ;;  %v447_v42 = vld [vmem:[%s919_s4 + $0x1] ss:$0 sm:$0xff] }
  0x3b   :  { %703 = vmatprep.subr.bf16.mxu1 %v806_v3 }
  0x3c   :  { %681 = vmatpush3.bf16.msra.mxu0 %v680_v39  ;;  %v355_v39 = vld [vmem:[#allocation5 + $0x1e0] sm:$0xff] }
  0x3d   :  { %682 = vmatprep.subr.bf16.mxu0 %v806_v3  ;;  %v752_v41 = vpack.c.bf16 %v356_v40, %v355_v39 }
  0x3e   :  { %705 = vmatpush3.bf16.msra.mxu1 %v704_v47  ;;  %v357_v47 = vld [vmem:[#allocation5 + $0x1f0] sm:$0xff] }
  0x3f   :  { %706 = vmatprep.subr.bf16.mxu1 %v806_v3  ;;  %v755_v49 = vpack.c.bf16 %v358_v48, %v357_v47 }
  0x40   :  { %684 = vmatpush3.bf16.msra.mxu0 %v683_v43 }
  0x41   :  { %709 = vmatprep.subr.bf16.mxu0 %v806_v3 }
  0x42   :  { %708 = vmatpush3.bf16.msra.mxu1 %v707_v50  ;;  %v450_v50 = vld [vmem:[%s919_s4 + $0x2] ss:$0 sm:$0xff] }
  0x43   :  { %554 = vmatmul.mubr.f32.vlgmr.msra.gmra.mrb[0].mxu0 %v49_v44  ;;  %733 = vmatprep.subr.bf16.mxu1 %v806_v3 }
  0x44   :  { %623 = vmatprep.mubr.msk.f32.mxu0 %vm807_vm0, %v808_v6  ;;  %711 = vmatpush3.bf16.msra.mxu0 %v710_v54  ;;  %v452_v54 = vld [vmem:[%s919_s4 + $0x3] ss:$0 sm:$0xff] }
  0x45   :  { %712 = vmatprep.subr.bf16.mxu0 %v806_v3 }
  0x48   :  { %714 = vmatpush3.bf16.msra.mxu0 %v713_v56 }
  0x49   :  { %715 = vmatprep.subr.bf16.mxu0 %v806_v3 }
  0x4c   :  { %717 = vmatpush3.bf16.msra.mxu0 %v716_v59 }
  0x4d   :  { %718 = vmatprep.subr.bf16.mxu0 %v806_v3 }
  0x50   :  { %720 = vmatpush3.bf16.msra.mxu0 %v719_v62 }
  0x51   :  { %721 = vmatprep.subr.bf16.mxu0 %v806_v3 }
  0x54   :  { %723 = vmatpush3.bf16.msra.mxu0 %v722_v1 }
  0x55   :  { %724 = vmatprep.subr.bf16.mxu0 %v806_v3 }
  0x58   :  { %726 = vmatpush3.bf16.msra.mxu0 %v725_v5 }
  0x59   :  { %727 = vmatprep.subr.bf16.mxu0 %v806_v3 }
  0x5c   :  { %729 = vmatpush3.bf16.msra.mxu0 %v728_v9 }
  0x5d   :  { %730 = vmatprep.subr.bf16.mxu0 %v806_v3 }
  0x60   :  { %732 = vmatpush3.bf16.msra.mxu0 %v731_v21 }
 0x116   :  { %v139_v11 = vpop.f32.mrb[0].mxu0 }
 0x117   :  { %v140_v12 = vadd.f32 %v445_v10, %v139_v11  ;;  %v555_v13 = vpop.f32.mrb[1].mxu0 }
 0x119   :  { %v143_v17 = vmax.f32 %v140_v12, 0.0 }
 0x11b   :  { %v148_v18 = vmul.f32 %v147_v16, %v143_v17 }
 0x11d   :  { %589 = vmatmul.mubr.msk.f32.vlgmr.msra.gmra.mrb[0].mxu1 %vm146_vm1, %v148_v18 }
 0x11e   :  { %658 = vmatprep.mubr.msk.f32.mxu1 %vm807_vm0, %v808_v6  ;;  %735 = vmatpush3.bf16.msra.mxu1 %v734_v25  ;;  %v349_v6 = vld [vmem:[#allocation5 + $0x1b0] sm:$0xff] }
 0x11f   :  { %736 = vmatprep.subr.bf16.mxu1 %v806_v3  ;;  %v743_v32 = vpack.c.bf16 %v350_v31, %v349_v6 }
 0x122   :  { %738 = vmatpush3.bf16.msra.mxu1 %v737_v27 }
 0x123   :  { %739 = vmatprep.subr.bf16.mxu1 %v806_v3 }
 0x126   :  { %741 = vmatpush3.bf16.msra.mxu1 %v740_v30 }
 0x127   :  { %742 = vmatprep.subr.bf16.mxu1 %v806_v3 }
 0x12a   :  { %744 = vmatpush3.bf16.msra.mxu1 %v743_v32 }
 0x12b   :  { %745 = vmatprep.subr.bf16.mxu1 %v806_v3 }
 0x12e   :  { %747 = vmatpush3.bf16.msra.mxu1 %v746_v35 }
 0x12f   :  { %748 = vmatprep.subr.bf16.mxu1 %v806_v3 }
 0x132   :  { %750 = vmatpush3.bf16.msra.mxu1 %v749_v38 }
 0x133   :  { %751 = vmatprep.subr.bf16.mxu1 %v806_v3 }
 0x136   :  { %753 = vmatpush3.bf16.msra.mxu1 %v752_v41 }
 0x137   :  { %754 = vmatprep.subr.bf16.mxu1 %v806_v3 }
 0x13a   :  { %756 = vmatpush3.bf16.msra.mxu1 %v755_v49 }
 0x1f0   :  { %v241_v43 = vpop.f32.mrb[0].mxu1 }
 0x1f1   :  { %v242_v44 = vadd.f32 %v447_v42, %v241_v43  ;;  %v590_v45 = vpop.f32.mrb[1].mxu1 }
 0x1f3   :  { %v245_v46 = vmax.f32 %v242_v44, 0.0 }
 0x1f5   :  { %624 = vmatmul.mubr.f32.vlgmr.msra.gmra.mrb[2].mxu0 %v245_v46 }
 0x2c8   :  { %v337_v51 = vpop.f32.mrb[2].mxu0 }
 0x2c9   :  { %v338_v52 = vadd.f32 %v450_v50, %v337_v51  ;;  %v625_v3 = vpop.f32.mrb[3].mxu0 }
 0x2cb   :  { %v341_v53 = vmax.f32 %v338_v52, 0.0 }
 0x2cd   :  { %659 = vmatmul.mubr.f32.vlgmr.msra.gmra.mrb[2].mxu1 %v341_v53 }
 0x3a0   :  { %v433_v55 = vpop.f32.mrb[2].mxu1 }
 0x3a1   :  { %v434_v56 = vadd.f32 %v452_v54, %v433_v55  ;;  %v660_v57 = vpop.f32.mrb[3].mxu1 }
 0x3a3   :  { %437 = vst [vmem:[%s920_s5] sm:$0xff] %v434_v56 }
 0x3a4   :  { %442 = vsyncpa [#allocation3], 1 }
 0x3a5   :  { %443 = vsyncpa [#allocation4], 1 }

</bundles_post_ra>
